<compile_context>
chip_gen: v5e
topology: v5e:2x2
jax: 0.10.0
libtpu: 0.0.40
codegen_flags: <defaults>
</compile_context>

<pallas_src>
import functools

import jax
import jax.numpy as jnp
from jax.experimental import pallas as pl
from jax.experimental.pallas import tpu as pltpu

STATE_SPACE_SIZE = 2
H1 = 8
H2 = 8
OUT = 1

LANE = 128        # TPU lane width (last-dim vreg axis)
CHUNK = 2048      # inner-chunk lanes: bounds vreg live ranges inside a block
MAX_TB = 32768    # default cap on lanes per grid step (amortizes step overhead)

# Packed-parameter block layout: one resident (8, 128) f32 block.
PARAM_ROWS = 8
PARAM_COLS = 128
_W1_COL = 0    # w1 (8, 2)  (out, in)
_B1_COL = 2    # b1 (8, 1)
_W2_COL = 8    # w2 (8, 8)  (out, in)
_B2_COL = 16   # b2 (8, 1)
_W3_COL = 24   # w3 padded to (8, 8): row 0 is the real (1, 8) weight, rest 0
_B3_COL = 32   # b3 padded to (8, 1): row 0 is the real bias, rest 0


def policy_mlp_kernel(x_ref, p_ref, o_ref, *, chunk, n_chunks):
    # Resident packed parameters (constant index_map -> fetched once, stays in
    # VMEM across grid steps). Static slices, hoisted out of the chunk loop.
    w1 = p_ref[:, _W1_COL:_W1_COL + STATE_SPACE_SIZE]   # (8, 2)
    b1 = p_ref[:, _B1_COL:_B1_COL + 1]                  # (8, 1)
    w2 = p_ref[:, _W2_COL:_W2_COL + H1]                 # (8, 8)
    b2 = p_ref[:, _B2_COL:_B2_COL + 1]                  # (8, 1)
    w3 = p_ref[:, _W3_COL:_W3_COL + H2]                 # (8, 8), rows 1..7 zero
    b3 = p_ref[:, _B3_COL:_B3_COL + 1]                  # (8, 1), rows 1..7 zero

    def compute(off):
        xc = x_ref[:, pl.ds(off, chunk)]                # (2, chunk), batch on lanes
        # Layer 1 (K=2) on the MXU instead of VPU broadcast-FMAs.
        h1 = jnp.maximum(
            jnp.dot(w1, xc, preferred_element_type=jnp.float32) + b1, 0.0)      # (8, chunk)
        # Layer 2 (8x8) on the MXU.
        h2 = jnp.maximum(
            jnp.dot(w2, h1, preferred_element_type=jnp.float32) + b2, 0.0)      # (8, chunk)
        # Layer 3: zero-padded to an 8x8 matmul (keeps M=8); row 0 is the answer.
        y8 = jnp.dot(w3, h2, preferred_element_type=jnp.float32) + b3           # (8, chunk)
        o_ref[:, pl.ds(off, chunk)] = y8[0:OUT, :].astype(o_ref.dtype)          # (1, chunk)

    if n_chunks == 1:
        compute(0)
    else:
        # Chunked inner loop: keeps per-chunk (8, chunk) intermediates within
        # the 64-vreg file instead of spilling (8, tb) arrays to VMEM.
        def body(c, carry):
            compute(pl.multiple_of(c * chunk, chunk))
            return carry

        jax.lax.fori_loop(0, n_chunks, body, 0, unroll=True)


def _choose_tiles(batch, max_tb):
    """Pick (tb, chunk, n_chunks, n_grid_steps) for a given batch size."""
    max_tb = max(LANE, (int(max_tb) // LANE) * LANE)
    b_ceil = -(-batch // LANE) * LANE          # round batch up to 128 lanes
    tb = min(b_ceil, max_tb)                   # small batches -> single step
    if tb > CHUNK:
        tb = -(-tb // CHUNK) * CHUNK           # make tb divisible by the chunk
    chunk = min(tb, CHUNK)
    n_chunks = tb // chunk
    n_steps = -(-batch // tb)
    return tb, chunk, n_chunks, n_steps


def pack_params(params):
    """Pack PyTorch-layout params into one resident (8, 128) f32 block."""
    w1, b1, w2, b2, w3, b3 = params
    p = jnp.zeros((PARAM_ROWS, PARAM_COLS), jnp.float32)
    p = p.at[:, _W1_COL:_W1_COL + STATE_SPACE_SIZE].set(w1)
    p = p.at[:, _B1_COL].set(b1)
    p = p.at[:, _W2_COL:_W2_COL + H1].set(w2)
    p = p.at[:, _B2_COL].set(b2)
    p = p.at[0, _W3_COL:_W3_COL + H2].set(w3[0])
    p = p.at[0, _B3_COL].set(b3[0])
    return p


def policy_net_forward(x, params, *, max_tb=MAX_TB):
    """PyTorch semantics: x (B, STATE_SPACE_SIZE) f32 -> (B, OUT) f32."""
    B = x.shape[0]
    tb, chunk, n_chunks, n_steps = _choose_tiles(B, max_tb)

    p = pack_params(params)

    # Lane-dense layout: batch on the trailing 128-wide lane axis. No zero-pad
    # copy — ragged last tiles use Pallas OOB block semantics (reads
    # unspecified, writes dropped; the garbage lanes never reach the output).
    # Callers that already hold the (S, B) layout can feed it here directly.
    xt = x.T                                            # (S, B)

    flops = 2 * B * (H1 * STATE_SPACE_SIZE + H2 * H1 + OUT * H2)
    bytes_accessed = 4 * B * (STATE_SPACE_SIZE + OUT) + 4 * PARAM_ROWS * PARAM_COLS

    out = pl.pallas_call(
        functools.partial(policy_mlp_kernel, chunk=chunk, n_chunks=n_chunks),
        out_shape=jax.ShapeDtypeStruct((OUT, B), jnp.float32),
        grid_spec=pltpu.PrefetchScalarGridSpec(
            num_scalar_prefetch=0,
            grid=(n_steps,),
            in_specs=[
                pl.BlockSpec((STATE_SPACE_SIZE, tb), lambda i: (0, i)),   # x tile
                pl.BlockSpec((PARAM_ROWS, PARAM_COLS), lambda i: (0, 0)), # resident params
            ],
            out_specs=pl.BlockSpec((OUT, tb), lambda i: (0, i)),
        ),
        compiler_params=pltpu.CompilerParams(
            dimension_semantics=("parallel",),   # shards steps across v7x TCs
        ),
        cost_estimate=pl.CostEstimate(
            flops=flops, transcendentals=0, bytes_accessed=bytes_accessed
        ),
    )(xt, p)

    # (1, B) -> (B, 1): same flat element order, so this is a free reshape —
    # no output transpose pass.
    return out.reshape(B, OUT)


def init_params(key):
    """Deterministic synthetic params with nn.Linear fan-in init, PyTorch shapes."""
    k1, k2, k3, k4, k5, k6 = jax.random.split(key, 6)

    def uinit(k, fan_in, shape):
        bound = 1.0 / jnp.sqrt(fan_in)
        return jax.random.uniform(k, shape, jnp.float32, -bound, bound)

    w1 = uinit(k1, STATE_SPACE_SIZE, (H1, STATE_SPACE_SIZE))
    b1 = uinit(k2, STATE_SPACE_SIZE, (H1,))
    w2 = uinit(k3, H1, (H2, H1))
    b2 = uinit(k4, H1, (H2,))
    w3 = uinit(k5, H2, (OUT, H2))
    b3 = uinit(k6, H2, (OUT,))
    return (w1, b1, w2, b2, w3, b3)


def reference_forward(x, params):
    """Pure-JAX reference (PyTorch nn.Linear semantics, highest precision)."""
    w1, b1, w2, b2, w3, b3 = params
    hi = jax.lax.Precision.HIGHEST
    h1 = jnp.maximum(jnp.dot(x, w1.T, precision=hi) + b1, 0.0)
    h2 = jnp.maximum(jnp.dot(h1, w2.T, precision=hi) + b2, 0.0)
    return jnp.dot(h2, w3.T, precision=hi) + b3


if __name__ == "__main__":
    key = jax.random.PRNGKey(0)
    pkey, xkey, xkey2 = jax.random.split(key, 3)
    params = init_params(pkey)

    fwd = jax.jit(policy_net_forward, static_argnames=("max_tb",))

    # Demo batch (not a multiple of 128): single grid step, single inner chunk,
    # ragged OOB tail exercised.
    B = 1000
    x = jax.random.normal(xkey, (B, STATE_SPACE_SIZE), jnp.float32)
    out = jax.block_until_ready(fwd(x, params))
    ref = reference_forward(x, params)
    assert out.shape == (B, OUT)
    assert jnp.allclose(out, ref, atol=1e-3, rtol=1e-3), "mismatch vs reference (B=1000)"

    # Also exercise the multi-chunk inner loop (tb=6144, 3 chunks, grid=(1,))
    # and the multi-step grid (tb=2048, grid=(3,)) code paths.
    B2 = 5000
    x2 = jax.random.normal(xkey2, (B2, STATE_SPACE_SIZE), jnp.float32)
    ref2 = reference_forward(x2, params)
    out2 = jax.block_until_ready(fwd(x2, params))
    assert jnp.allclose(out2, ref2, atol=1e-3, rtol=1e-3), "mismatch (multi-chunk path)"
    out3 = jax.block_until_ready(fwd(x2, params, max_tb=2048))
    assert jnp.allclose(out3, ref2, atol=1e-3, rtol=1e-3), "mismatch (multi-step grid path)"

    print("KERNEL_OK")
</pallas_src>

<mosaic_0001>
module attributes {stable_mosaic.version = 11 : i64} {
  func.func @policy_mlp_kernel(%arg0: i32, %arg1: memref<2x1024xf32, #tpu.memory_space<vmem>>, %arg2: memref<8x128xf32, #tpu.memory_space<vmem>>, %arg3: memref<1x1024xf32, #tpu.memory_space<vmem>>) attributes {dimension_semantics = [#tpu.dimension_semantics<parallel>], iteration_bounds = array<i64: 1>, scalar_prefetch = 0 : i64, scratch_operands = 0 : i64, tpu.core_type = #tpu.core_type<tc>, window_params = [{transform_indices = @transform_0, window_bounds = array<i64: 2, 1024>}, {pipeline_mode = #tpu.pipeline_mode<synchronous>, transform_indices = @transform_1, window_bounds = array<i64: 8, 128>}, {transform_indices = @transform_2, window_bounds = array<i64: 1, 1024>}]} {
    %c0 = arith.constant 0 : index
    %c0_0 = arith.constant 0 : index
    %0 = vector.load %arg2[%c0, %c0_0] : memref<8x128xf32, #tpu.memory_space<vmem>>, vector<8x2xf32>
    %c0_1 = arith.constant 0 : index
    %c2 = arith.constant 2 : index
    %1 = vector.load %arg2[%c0_1, %c2] : memref<8x128xf32, #tpu.memory_space<vmem>>, vector<8x1xf32>
    %c0_2 = arith.constant 0 : index
    %c8 = arith.constant 8 : index
    %2 = vector.load %arg2[%c0_2, %c8] : memref<8x128xf32, #tpu.memory_space<vmem>>, vector<8x8xf32>
    %c0_3 = arith.constant 0 : index
    %c16 = arith.constant 16 : index
    %3 = vector.load %arg2[%c0_3, %c16] : memref<8x128xf32, #tpu.memory_space<vmem>>, vector<8x1xf32>
    %c0_4 = arith.constant 0 : index
    %c24 = arith.constant 24 : index
    %4 = vector.load %arg2[%c0_4, %c24] : memref<8x128xf32, #tpu.memory_space<vmem>>, vector<8x8xf32>
    %c0_5 = arith.constant 0 : index
    %c32 = arith.constant 32 : index
    %5 = vector.load %arg2[%c0_5, %c32] : memref<8x128xf32, #tpu.memory_space<vmem>>, vector<8x1xf32>
    %c0_6 = arith.constant 0 : index
    %c0_7 = arith.constant 0 : index
    %6 = vector.load %arg1[%c0_6, %c0_7] : memref<2x1024xf32, #tpu.memory_space<vmem>>, vector<2x1024xf32>
    %cst = arith.constant dense<0.000000e+00> : vector<8x1024xf32>
    %7 = tpu.matmul %0, %6, %cst {dimension_numbers = #tpu.dot_dimension_numbers<[1], [0], [0], [1], [0, 0, 1, 1], [], []>} : vector<8x2xf32>, vector<2x1024xf32>, vector<8x1024xf32> -> vector<8x1024xf32>
    %8 = vector.broadcast %1 : vector<8x1xf32> to vector<8x1024xf32>
    %9 = arith.addf %7, %8 : vector<8x1024xf32>
    %cst_8 = arith.constant 0.000000e+00 : f32
    %10 = vector.broadcast %cst_8 : f32 to vector<8x1024xf32>
    %11 = arith.maximumf %9, %10 : vector<8x1024xf32>
    %cst_9 = arith.constant dense<0.000000e+00> : vector<8x1024xf32>
    %12 = tpu.matmul %2, %11, %cst_9 {dimension_numbers = #tpu.dot_dimension_numbers<[1], [0], [0], [1], [0, 0, 1, 1], [], []>} : vector<8x8xf32>, vector<8x1024xf32>, vector<8x1024xf32> -> vector<8x1024xf32>
    %13 = vector.broadcast %3 : vector<8x1xf32> to vector<8x1024xf32>
    %14 = arith.addf %12, %13 : vector<8x1024xf32>
    %cst_10 = arith.constant 0.000000e+00 : f32
    %15 = vector.broadcast %cst_10 : f32 to vector<8x1024xf32>
    %16 = arith.maximumf %14, %15 : vector<8x1024xf32>
    %cst_11 = arith.constant dense<0.000000e+00> : vector<8x1024xf32>
    %17 = tpu.matmul %4, %16, %cst_11 {dimension_numbers = #tpu.dot_dimension_numbers<[1], [0], [0], [1], [0, 0, 1, 1], [], []>} : vector<8x8xf32>, vector<8x1024xf32>, vector<8x1024xf32> -> vector<8x1024xf32>
    %18 = vector.broadcast %5 : vector<8x1xf32> to vector<8x1024xf32>
    %19 = arith.addf %17, %18 : vector<8x1024xf32>
    %20 = vector.extract_strided_slice %19 {offsets = [0, 0], sizes = [1, 1024], strides = [1, 1]} : vector<8x1024xf32> to vector<1x1024xf32>
    %c0_12 = arith.constant 0 : index
    %c0_13 = arith.constant 0 : index
    %21 = vector.load %arg3[%c0_12, %c0_13] : memref<1x1024xf32, #tpu.memory_space<vmem>>, vector<1x1024xf32>
    tpu.vector_store %arg3[%c0_12, %c0_13], %20 {strides = array<i32>} : memref<1x1024xf32, #tpu.memory_space<vmem>>, vector<1x1024xf32>,
    return
  }
  func.func @transform_0(%arg0: i32) -> (i32, i32) {
    %c0_i32 = arith.constant 0 : i32
    %c0_i32_0 = arith.constant 0 : i32
    return %c0_i32, %arg0 : i32, i32
  }
  func.func @transform_1(%arg0: i32) -> (i32, i32) {
    %c0_i32 = arith.constant 0 : i32
    %c0_i32_0 = arith.constant 0 : i32
    %c0_i32_1 = arith.constant 0 : i32
    return %c0_i32, %c0_i32_0 : i32, i32
  }
  func.func @transform_2(%arg0: i32) -> (i32, i32) {
    %c0_i32 = arith.constant 0 : i32
    %c0_i32_0 = arith.constant 0 : i32
    return %c0_i32, %arg0 : i32, i32
  }
}

</mosaic_0001>

<bundles_post_ra>
// kernel: policy_net_forward.1
= control target key start
LH: loop header
LB: loop body
LE: loop exit
PB: predicated region body
PF: predicated region fallthrough
CT: control target
= control target key end

     0   :  { %v680_v3 = vmov 2   ;;  %s761_s0 = inlined_call_operand.vmem [shape: f32[2,1000], index: 0, kind: input, shape index: {}]   ;;  %s762_s1 = inlined_call_operand.vmem [shape: f32[8,128], index: 1, kind: input, shape index: {}]   ;;  %s763_s2 = inlined_call_operand.hbm [shape: f32[1,1000], index: 2, kind: output, shape index: {}]  }
   0x1   :  { %v13_v0 = vld [vmem:[%s761_s0] sm:$0xff]  ;;  %v14_v1 = vld [vmem:[%s761_s0 + $0x8] sm:$0xff]  ;;  %650 = vset.pattern.permute.xlu0 %v680_v3 }
   0x2   :  { %22 = vst [vmem:[#allocation1] ss:$4 sm:$0xff] %v13_v0  ;;  %v710_v2 = vld [vmem:[%s762_s1] sm:$0xff] }
   0x3   :  { %7 = vsyncpa [#allocation3], 0  ;;  %24 = vst [vmem:[#allocation1 + $0x20] ss:$4 sm:$0xff] %v14_v1  ;;  %17 = vperm.xlu0 %650, %v710_v2   ;;  %vm36_vm0 = vcmask 1041408   ;;  %vm33_vm1 = vcmask 15360  }
   0x4   :  { %s681_s0 = smov 120   ;;  %v682_v12 = vmov 16   ;;  %s683_s1 = smov 104   ;;  %vm227_vm2 = vcmask 64512   ;;  %v684_v40 = vmov 32   ;;  %vm583_vm3 = vcmask 1042434  }
   0x5   :  { %651 = vset.pattern.permute.xlu1 %v682_v12  ;;  %652 = vset.pattern.permute.xlu2 %v684_v40  ;;  %vm586_vm4 = vcmask 1044484   ;;  %vm588_vm5 = vcmask 1046534   ;;  %vm581_vm6 = vcmask 1040384   ;;  %vm590_vm7 = vcmask 1045508   ;;  %s685_s15 = smov [#allocation2]   ;;  %s603_s19 = sshll.u32 %s763_s2, 4  ;;  %s604_s19 = int_to_ptr.hbm [resolvable:$true] %s603_s19 }
   0x6   :  { %222 = vperm.xlu1 %651, %v710_v2   ;;  %399 = vperm.xlu2 %652, %v710_v2   ;;  %s601_s16 = sshll.u32 %s685_s15, 4  ;;  %vm592_vm8 = vcmask 1043456   ;;  %s602_s16 = int_to_ptr.vmem [resolvable:$true] %s601_s16 }
   0x9   :  { %v25_v4 = vld.sshfl [vmem:[#allocation1] sm:$0xff pattern:$0x73625140]  ;;  %v26_v5 = vld.sshfl [vmem:[#allocation1 + $0x8] sm:$0xff pattern:$0x73625140] }
   0xa   :  { %612 = vmatpush.msk.msra.mxu0 %vm36_vm0, %v25_v4  ;;  %614 = vmatpush.msk.msra.mxu1 %vm36_vm0, %v26_v5  ;;  %v27_v6 = vld.sshfl [vmem:[#allocation1 + $0x10] sm:$0xff pattern:$0x73625140]  ;;  %v28_v7 = vld.sshfl [vmem:[#allocation1 + $0x18] sm:$0xff pattern:$0x73625140] }
   0xb   :  { %616 = vmatpush.msk.msra.mxu2 %vm36_vm0, %v27_v6  ;;  %618 = vmatpush.msk.msra.mxu3 %vm36_vm0, %v28_v7  ;;  %v29_v8 = vld.sshfl [vmem:[#allocation1 + $0x20] sm:$0xff pattern:$0x73625140]  ;;  %v30_v9 = vld.sshfl [vmem:[#allocation1 + $0x28] sm:$0xff pattern:$0x73625140] }
   0xc   :  { %613 = vmatmul.msk.f32.vlgmr.msra.gmra.mxu0 %vm33_vm1, %v710_v2  ;;  %615 = vmatmul.msk.f32.vlgmr.msra.gmra.mxu1 %vm33_vm1, %v710_v2  ;;  %v31_v10 = vld.sshfl [vmem:[#allocation1 + $0x30] sm:$0xff pattern:$0x73625140]  ;;  %v32_v11 = vld.sshfl [vmem:[#allocation1 + $0x38] sm:$0xff pattern:$0x73625140] }
   0xd   :  { %617 = vmatmul.msk.f32.vlgmr.msra.gmra.mxu2 %vm33_vm1, %v710_v2  ;;  %619 = vmatmul.msk.f32.vlgmr.msra.gmra.mxu3 %vm33_vm1, %v710_v2 }
   0xe   :  { %620 = vmatpush.msk.msrb.mxu0 %vm36_vm0, %v29_v8  ;;  %622 = vmatpush.msk.msrb.mxu1 %vm36_vm0, %v30_v9 }
   0xf   :  { %624 = vmatpush.msk.msrb.mxu2 %vm36_vm0, %v31_v10  ;;  %626 = vmatpush.msk.msrb.mxu3 %vm36_vm0, %v32_v11 }
  0x10   :  { %225 = vrot.lane.b32.xlu0 %v710_v2, %s681_s0  ;;  %402 = vrot.lane.b32.xlu1 %v710_v2, %s683_s1 }
  0x11   :  { %653 = vset.pattern.permute.xlu0 %v684_v40 }
  0x14   :  { %621 = vmatmul.msk.f32.vlgmr.msrb.gmra.mxu0 %vm33_vm1, %v710_v2  ;;  %623 = vmatmul.msk.f32.vlgmr.msrb.gmra.mxu1 %vm33_vm1, %v710_v2 }
  0x15   :  { %625 = vmatmul.msk.f32.vlgmr.msrb.gmra.mxu2 %vm33_vm1, %v710_v2  ;;  %627 = vmatmul.msk.f32.vlgmr.msrb.gmra.mxu3 %vm33_vm1, %v710_v2 }
  0x60   :  { %v400_v6 = vpop.permute.xlu2 %399 }
  0x75   :  { %v18_v13 = vpop.permute.xlu0 %17 }
  0x78   :  { %v223_v39 = vpop.permute.xlu1 %222 }
  0x82   :  { %v226_v20 = vpop.permute.xlu0 %225  ;;  %v403_v47 = vpop.permute.xlu1 %402 }
  0x89   :  { %v70_v14 = vpop.f32.mrf.mxu0  ;;  %v90_v15 = vpop.f32.mrf.mxu1 }
  0x8a   :  { %v71_v16 = vadd.f32 %v70_v14, %v18_v13  ;;  %v91_v17 = vadd.f32 %v90_v15, %v18_v13 }
  0x8c   :  { %v213_v18 = vmax.f32 %v71_v16, 0.0  ;;  %v214_v19 = vmax.f32 %v91_v17, 0.0 }
  0x8e   :  { %245 = vmatpush.msra.mxu0 %v213_v18  ;;  %265 = vmatpush.msra.mxu1 %v214_v19 }
  0x8f   :  { %628 = vmatmul.msk.f32.vlgmr.msra.gmra.mxu0 %vm227_vm2, %v226_v20  ;;  %629 = vmatmul.msk.f32.vlgmr.msra.gmra.mxu1 %vm227_vm2, %v226_v20 }
  0x90   :  { %v110_v21 = vpop.f32.mrf.mxu2  ;;  %v130_v22 = vpop.f32.mrf.mxu3 }
  0x91   :  { %v111_v23 = vadd.f32 %v110_v21, %v18_v13  ;;  %v131_v24 = vadd.f32 %v130_v22, %v18_v13  ;;  %v150_v25 = vpop.f32.mrf.mxu0  ;;  %v170_v26 = vpop.f32.mrf.mxu1 }
  0x92   :  { %v151_v27 = vadd.f32 %v150_v25, %v18_v13  ;;  %v171_v28 = vadd.f32 %v170_v26, %v18_v13 }
  0x93   :  { %v215_v29 = vmax.f32 %v111_v23, 0.0  ;;  %v216_v30 = vmax.f32 %v131_v24, 0.0 }
  0x94   :  { %v217_v31 = vmax.f32 %v151_v27, 0.0  ;;  %v218_v32 = vmax.f32 %v171_v28, 0.0 }
  0x95   :  { %285 = vmatpush.msra.mxu2 %v215_v29  ;;  %305 = vmatpush.msra.mxu3 %v216_v30 }
  0x96   :  { %630 = vmatmul.msk.f32.vlgmr.msra.gmra.mxu2 %vm227_vm2, %v226_v20  ;;  %631 = vmatmul.msk.f32.vlgmr.msra.gmra.mxu3 %vm227_vm2, %v226_v20 }
  0x97   :  { %325 = vmatpush.msrb.mxu0 %v217_v31  ;;  %345 = vmatpush.msrb.mxu1 %v218_v32 }
  0x98   :  { %v190_v33 = vpop.f32.mrf.mxu2  ;;  %v210_v34 = vpop.f32.mrf.mxu3  ;;  %632 = vmatmul.msk.f32.vlgmr.msrb.gmra.mxu0 %vm227_vm2, %v226_v20  ;;  %633 = vmatmul.msk.f32.vlgmr.msrb.gmra.mxu1 %vm227_vm2, %v226_v20 }
  0x99   :  { %v191_v35 = vadd.f32 %v190_v33, %v18_v13  ;;  %v211_v36 = vadd.f32 %v210_v34, %v18_v13 }
  0x9b   :  { %v219_v37 = vmax.f32 %v191_v35, 0.0  ;;  %v220_v38 = vmax.f32 %v211_v36, 0.0 }
  0x9d   :  { %365 = vmatpush.msrb.mxu2 %v219_v37  ;;  %385 = vmatpush.msrb.mxu3 %v220_v38 }
  0x9e   :  { %634 = vmatmul.msk.f32.vlgmr.msrb.gmra.mxu2 %vm227_vm2, %v226_v20  ;;  %635 = vmatmul.msk.f32.vlgmr.msrb.gmra.mxu3 %vm227_vm2, %v226_v20 }
 0x10c   :  { %v247_v41 = vpop.f32.mrf.mxu0  ;;  %v267_v42 = vpop.f32.mrf.mxu1 }
 0x10d   :  { %v248_v43 = vadd.f32 %v247_v41, %v223_v39  ;;  %v268_v44 = vadd.f32 %v267_v42, %v223_v39 }
 0x10f   :  { %v390_v45 = vmax.f32 %v248_v43, 0.0  ;;  %v391_v46 = vmax.f32 %v268_v44, 0.0 }
 0x111   :  { %421 = vmatpush.msra.mxu0 %v390_v45  ;;  %441 = vmatpush.msra.mxu1 %v391_v46 }
 0x112   :  { %636 = vmatmul.msk.f32.vlgmr.msra.gmra.mxu0 %vm227_vm2, %v403_v47  ;;  %637 = vmatmul.msk.f32.vlgmr.msra.gmra.mxu1 %vm227_vm2, %v403_v47 }
 0x115   :  { %v327_v48 = vpop.f32.mrf.mxu0  ;;  %v347_v49 = vpop.f32.mrf.mxu1 }
 0x116   :  { %v328_v50 = vadd.f32 %v327_v48, %v223_v39  ;;  %v348_v51 = vadd.f32 %v347_v49, %v223_v39 }
 0x118   :  { %v394_v52 = vmax.f32 %v328_v50, 0.0  ;;  %v395_v53 = vmax.f32 %v348_v51, 0.0 }
 0x119   :  { %v287_v54 = vpop.f32.mrf.mxu2  ;;  %v307_v55 = vpop.f32.mrf.mxu3 }
 0x11a   :  { %v288_v56 = vadd.f32 %v287_v54, %v223_v39  ;;  %v308_v57 = vadd.f32 %v307_v55, %v223_v39  ;;  %501 = vmatpush.msrb.mxu0 %v394_v52  ;;  %521 = vmatpush.msrb.mxu1 %v395_v53 }
 0x11b   :  { %640 = vmatmul.msk.f32.vlgmr.msrb.gmra.mxu0 %vm227_vm2, %v403_v47  ;;  %641 = vmatmul.msk.f32.vlgmr.msrb.gmra.mxu1 %vm227_vm2, %v403_v47 }
 0x11c   :  { %v392_v58 = vmax.f32 %v288_v56, 0.0  ;;  %v393_v59 = vmax.f32 %v308_v57, 0.0 }
 0x11e   :  { %461 = vmatpush.msra.mxu2 %v392_v58  ;;  %481 = vmatpush.msra.mxu3 %v393_v59 }
 0x11f   :  { %638 = vmatmul.msk.f32.vlgmr.msra.gmra.mxu2 %vm227_vm2, %v403_v47  ;;  %639 = vmatmul.msk.f32.vlgmr.msra.gmra.mxu3 %vm227_vm2, %v403_v47 }
 0x121   :  { %v367_v60 = vpop.f32.mrf.mxu2  ;;  %v387_v61 = vpop.f32.mrf.mxu3 }
 0x122   :  { %v368_v62 = vadd.f32 %v367_v60, %v223_v39  ;;  %v388_v63 = vadd.f32 %v387_v61, %v223_v39 }
 0x124   :  { %v396_v0 = vmax.f32 %v368_v62, 0.0  ;;  %v397_v1 = vmax.f32 %v388_v63, 0.0 }
 0x126   :  { %541 = vmatpush.msrb.mxu2 %v396_v0  ;;  %561 = vmatpush.msrb.mxu3 %v397_v1 }
 0x127   :  { %642 = vmatmul.msk.f32.vlgmr.msrb.gmra.mxu2 %vm227_vm2, %v403_v47  ;;  %643 = vmatmul.msk.f32.vlgmr.msrb.gmra.mxu3 %vm227_vm2, %v403_v47 }
 0x18f   :  { %v423_v2 = vpop.f32.mrf.mxu0  ;;  %v443_v3 = vpop.f32.mrf.mxu1 }
 0x190   :  { %v444_v11 = vadd.f32 %v443_v3, %v400_v6  ;;  %v424_v18 = vadd.f32 %v423_v2, %v400_v6 }
 0x192   :  { %v574_v19 = vrot.slane %v444_v11, 7 }
 0x194   :  { %v582_v29 = vsel %vm581_vm6, %v424_v18, %v574_v19 }
 0x198   :  { %v503_v7 = vpop.f32.mrf.mxu0  ;;  %v523_v8 = vpop.f32.mrf.mxu1 }
 0x199   :  { %v504_v12 = vadd.f32 %v503_v7, %v400_v6  ;;  %v524_v13 = vadd.f32 %v523_v8, %v400_v6 }
 0x19b   :  { %v577_v20 = vrot.slane %v504_v12, 4  ;;  %v578_v21 = vrot.slane %v524_v13, 3 }
 0x19d   :  { %v587_v27 = vsel %vm586_vm4, %v577_v20, %v578_v21 }
 0x1a2   :  { %v463_v4 = vpop.f32.mrf.mxu2  ;;  %v483_v5 = vpop.f32.mrf.mxu3 }
 0x1a3   :  { %v464_v9 = vadd.f32 %v463_v4, %v400_v6  ;;  %v484_v10 = vadd.f32 %v483_v5, %v400_v6 }
 0x1a5   :  { %v575_v14 = vrot.slane %v464_v9, 6  ;;  %v576_v15 = vrot.slane %v484_v10, 5 }
 0x1a7   :  { %v584_v24 = vsel %vm583_vm3, %v575_v14, %v576_v15 }
 0x1a8   :  { %v585_v30 = vsel %vm36_vm0, %v582_v29, %v584_v24 }
 0x1aa   :  { %v543_v16 = vpop.f32.mrf.mxu2  ;;  %v563_v17 = vpop.f32.mrf.mxu3 }
 0x1ab   :  { %v544_v22 = vadd.f32 %v543_v16, %v400_v6  ;;  %v564_v23 = vadd.f32 %v563_v17, %v400_v6 }
 0x1ad   :  { %v579_v25 = vrot.slane %v544_v22, 2  ;;  %v580_v26 = vrot.slane %v564_v23, 1 }
 0x1af   :  { %v589_v28 = vsel %vm588_vm5, %v579_v25, %v580_v26 }
 0x1b0   :  { %v591_v31 = vsel %vm590_vm7, %v587_v27, %v589_v28 }
 0x1b1   :  { %v593_v32 = vsel %vm592_vm8, %v585_v30, %v591_v31 }
 0x1b2   :  { %595 = vst [vmem:[#allocation2] sm:$0xff] %v593_v32 }
 0x1b3   :  { %606 = dma.vmem_to_hbm [thread:$0]  %s602_s16, 128, %s604_s19, [#allocation3]  }
 0x1b4   :  { %678 = dma.done.wait [#allocation3], 128  }
 0x1b5   :  { %679 = vsyncadd [#allocation3], 4294967168 }
 0x1b6   :  { %611 = vsyncpa [#allocation3], 1 }

</bundles_post_ra>
